<compile_context>
chip_gen: v7x
topology: tpu7x:2x2x1
jax: 0.10.0
libtpu: 0.0.40
codegen_flags: <defaults>
</compile_context>

<pallas_src>
import functools

import numpy as np
import jax
import jax.numpy as jnp
from jax.experimental import pallas as pl
from jax.experimental.pallas import tpu as pltpu


def _round_up(x, m):
    return ((x + m - 1) // m) * m


# ---------------------------------------------------------------------------
# Kernel 1: per-token projections (L2 normalize + fused split first linear).
# ---------------------------------------------------------------------------
def _project_kernel(h_ref, w1f_ref, b1_ref, a_ref, bT_ref, *, normalize, hp):
    h = h_ref[0].astype(jnp.float32)                                    # (T, D)
    if normalize:
        # torch F.normalize(p=2): x / max(||x||, 1e-12)  ==  x * rsqrt(max(ss, 1e-24))
        ss = jnp.sum(h * h, axis=-1, keepdims=True)
        h = h * jax.lax.rsqrt(jnp.maximum(ss, 1e-24))
    ab = jnp.dot(h, w1f_ref[...], preferred_element_type=jnp.float32)   # (T, 2*hp)
    a_ref[0] = ab[:, :hp] + b1_ref[...]                                 # (T, hp)
    bT_ref[0] = jnp.transpose(ab[:, hp:])                               # (hp, T)


# ---------------------------------------------------------------------------
# Kernel 2 (fast path, C == 1, |w2|*std folded into a/bT): sign-split reduction.
# ---------------------------------------------------------------------------
def _pairwise_c1_kernel(a_ref, bT_ref, o_ref, *,
                        hk, n_pos_chunks, n_neg_chunks, bias, unroll):
    TI = a_ref.shape[1]
    TJ = bT_ref.shape[2]

    def partial_sum(k):
        h0 = pl.multiple_of(k * hk, hk)
        a_c = a_ref[0, :, pl.ds(h0, hk)]                    # (TI, hk)
        b_c = bT_ref[0, pl.ds(h0, hk), :]                   # (hk, TJ)
        z = jnp.maximum(a_c[:, :, None] + b_c[None, :, :], 0.0)   # (TI, hk, TJ)
        return jnp.sum(z, axis=1)                           # (TI, TJ)

    acc = jnp.full((TI, TJ), bias, dtype=jnp.float32)       # b2*std+mean folded in
    if n_pos_chunks:
        acc = jax.lax.fori_loop(0, n_pos_chunks,
                                lambda k, s: s + partial_sum(k),
                                acc, unroll=unroll)
    if n_neg_chunks:
        acc = jax.lax.fori_loop(0, n_neg_chunks,
                                lambda k, s: s - partial_sum(n_pos_chunks + k),
                                acc, unroll=unroll)
    o_ref[0] = acc                                          # lane-dense tile store


# ---------------------------------------------------------------------------
# Kernel 2 (general path, any C / traced weights): slab computed once per chunk.
# ---------------------------------------------------------------------------
def _pairwise_kernel(a_ref, bT_ref, w2_ref, o_ref, *, hk, n_chunks, n_labels, unroll):
    TI = a_ref.shape[1]
    TJ = bT_ref.shape[2]

    def body(k, accs):
        h0 = pl.multiple_of(k * hk, hk)
        a_c = a_ref[0, :, pl.ds(h0, hk)]                    # (TI, hk)
        b_c = bT_ref[0, pl.ds(h0, hk), :]                   # (hk, TJ)
        w_c = w2_ref[pl.ds(h0, hk), :]                      # (hk, C)
        z = jnp.maximum(a_c[:, :, None] + b_c[None, :, :], 0.0)   # (TI, hk, TJ)
        return tuple(accs[c] + jnp.sum(z * w_c[:, c][None, :, None], axis=1)
                     for c in range(n_labels))

    accs = tuple(jnp.zeros((TI, TJ), jnp.float32) for _ in range(n_labels))
    accs = jax.lax.fori_loop(0, n_chunks, body, accs, unroll=unroll)
    for c in range(n_labels):
        o_ref[0, c] = accs[c]


# ---------------------------------------------------------------------------
# Wrapper
# ---------------------------------------------------------------------------
def contact_prediction_forward(h, w1, b1, w2, b2, *,
                               normalize_hidden_states=True,
                               normalization=False,
                               target_mean=0.0,
                               target_std=1.0):
    """h: (B, L, D) trunk hidden states.
    w1: (2D, H) first classifier weight (input-major = torch weight.T), b1: (H,)
    w2: (H, C)  second classifier weight (input-major),                 b2: (C,)
    Returns (B, L, L, C)."""
    B, L, D = h.shape
    twoD, H = w1.shape
    assert twoD == 2 * D
    C = w2.shape[1]
    f32 = jnp.float32
    HK = 16                       # H-chunk size inside kernel 2
    UNROLL = 2

    h = h.astype(f32)
    std = float(target_std) if normalization else 1.0
    mean = float(target_mean) if normalization else 0.0

    # ---- sequence tiling: minimize padding, widen the lane (j) tile if it fits.
    if L <= 256:
        Lp = _round_up(L, 8)
        TI = TJ = Lp
    else:
        Lp = _round_up(L, 128)
        TI = 128
        TJ = 256 if Lp % 256 == 0 else 128
    if Lp != L:
        h = jnp.pad(h, ((0, 0), (0, Lp - L), (0, 0)))
    n_ti, n_tj = Lp // TI, Lp // TJ

    # ---- weight preparation --------------------------------------------------
    # Fast path (C == 1, concrete weights): fold |w2*std| into W1a/W1b/b1 with a
    # sign-split permutation of H (positive-weight channels first, then negative;
    # zero-weight channels dropped; each group zero-padded to a chunk multiple).
    fast = (C == 1)
    if fast:
        try:
            w1_np = np.asarray(w1, dtype=np.float32)
            b1_np = np.asarray(b1, dtype=np.float32)
            w2_np = np.asarray(w2, dtype=np.float32)[:, 0] * std
            b2_eff_scalar = float(np.asarray(b2, dtype=np.float32).reshape(-1)[0]) * std + mean
        except Exception:
            fast = False                    # traced weights -> general path
    if fast:
        pos = np.nonzero(w2_np > 0.0)[0]
        neg = np.nonzero(w2_np < 0.0)[0]
        if pos.size + neg.size == 0:
            fast = False                    # degenerate all-zero head
    if fast:
        n_pc = -(-pos.size // HK) if pos.size else 0
        n_nc = -(-neg.size // HK) if neg.size else 0
        Hp = (n_pc + n_nc) * HK
        w1a = np.zeros((D, Hp), np.float32)
        w1b = np.zeros((D, Hp), np.float32)
        b1e = np.zeros((Hp,), np.float32)
        if pos.size:
            m = w2_np[pos]
            w1a[:, :pos.size] = w1_np[:D, pos] * m
            w1b[:, :pos.size] = w1_np[D:, pos] * m
            b1e[:pos.size] = b1_np[pos] * m
        if neg.size:
            off = n_pc * HK
            m = -w2_np[neg]
            w1a[:, off:off + neg.size] = w1_np[:D, neg] * m
            w1b[:, off:off + neg.size] = w1_np[D:, neg] * m
            b1e[off:off + neg.size] = b1_np[neg] * m
        w1f = jnp.asarray(np.concatenate([w1a, w1b], axis=1))          # (D, 2Hp)
        b1_eff = jnp.asarray(b1e).reshape(1, Hp)
    else:
        Hp = _round_up(H, HK)
        padH = Hp - H
        w1a = jnp.pad(w1[:D].astype(f32), ((0, 0), (0, padH)))
        w1b = jnp.pad(w1[D:].astype(f32), ((0, 0), (0, padH)))
        w1f = jnp.concatenate([w1a, w1b], axis=1)                      # (D, 2Hp)
        b1_eff = jnp.pad(b1.astype(f32), (0, padH)).reshape(1, Hp)
        w2_eff = jnp.pad(w2.astype(f32) * std, ((0, padH), (0, 0)))    # (Hp, C)
        b2_eff = b2.astype(f32) * std + mean                           # (C,)
        n_chunks = Hp // HK

    # ---- Kernel 1: per-token projections (once per row-tile) -----------------
    proj = functools.partial(_project_kernel,
                             normalize=bool(normalize_hidden_states), hp=Hp)
    a, bT = pl.pallas_call(
        proj,
        out_shape=(jax.ShapeDtypeStruct((B, Lp, Hp), f32),
                   jax.ShapeDtypeStruct((B, Hp, Lp), f32)),
        grid_spec=pltpu.PrefetchScalarGridSpec(
            num_scalar_prefetch=0,
            grid=(B, n_ti),
            in_specs=[
                pl.BlockSpec((1, TI, D), lambda b, i: (b, i, 0)),      # h row-tile
                pl.BlockSpec((D, 2 * Hp), lambda b, i: (0, 0)),        # [W1a|W1b]
                pl.BlockSpec((1, Hp), lambda b, i: (0, 0)),            # b1
            ],
            out_specs=[
                pl.BlockSpec((1, TI, Hp), lambda b, i: (b, i, 0)),     # a
                pl.BlockSpec((1, Hp, TI), lambda b, i: (b, 0, i)),     # b^T
            ]),
        compiler_params=pltpu.CompilerParams(
            dimension_semantics=("parallel", "parallel"),
            vmem_limit_bytes=32 * 1024 * 1024),
    )(h, w1f, b1_eff)

    # ---- Kernel 2: tiled pairwise head ---------------------------------------
    if fast:
        pair = functools.partial(_pairwise_c1_kernel, hk=HK,
                                 n_pos_chunks=n_pc, n_neg_chunks=n_nc,
                                 bias=b2_eff_scalar, unroll=UNROLL)
        p = pl.pallas_call(
            pair,
            out_shape=jax.ShapeDtypeStruct((B, Lp, Lp), f32),
            grid_spec=pltpu.PrefetchScalarGridSpec(
                num_scalar_prefetch=0,
                grid=(B, n_ti, n_tj),
                in_specs=[
                    pl.BlockSpec((1, TI, Hp), lambda b, i, j: (b, i, 0)),   # a (i-tile)
                    pl.BlockSpec((1, Hp, TJ), lambda b, i, j: (b, 0, j)),   # bT (j-tile)
                ],
                out_specs=pl.BlockSpec((1, TI, TJ), lambda b, i, j: (b, i, j))),
            compiler_params=pltpu.CompilerParams(
                dimension_semantics=("parallel", "parallel", "arbitrary"),
                vmem_limit_bytes=48 * 1024 * 1024),
        )(a, bT)
        p = p[:, :L, :L]
        pred = (p + jnp.swapaxes(p, 1, 2)) * 0.5            # b2*std+mean already inside
        return pred[..., None]

    pair = functools.partial(_pairwise_kernel, hk=HK, n_chunks=n_chunks,
                             n_labels=C, unroll=UNROLL)
    p = pl.pallas_call(
        pair,
        out_shape=jax.ShapeDtypeStruct((B, C, Lp, Lp), f32),
        grid_spec=pltpu.PrefetchScalarGridSpec(
            num_scalar_prefetch=0,
            grid=(B, n_ti, n_tj),
            in_specs=[
                pl.BlockSpec((1, TI, Hp), lambda b, i, j: (b, i, 0)),
                pl.BlockSpec((1, Hp, TJ), lambda b, i, j: (b, 0, j)),
                pl.BlockSpec((Hp, C), lambda b, i, j: (0, 0)),
            ],
            out_specs=pl.BlockSpec((1, C, TI, TJ), lambda b, i, j: (b, 0, i, j))),
        compiler_params=pltpu.CompilerParams(
            dimension_semantics=("parallel", "parallel", "arbitrary"),
            vmem_limit_bytes=48 * 1024 * 1024),
    )(a, bT, w2_eff)
    p = p[:, :, :L, :L]
    pred = jnp.transpose(p, (0, 2, 3, 1))                   # (B, L, L, C)
    pred = (pred + jnp.swapaxes(pred, 1, 2)) * 0.5
    return pred + b2_eff


# ---------------------------------------------------------------------------
# Pure-JAX reference mirroring the PyTorch forward (trunk output = h).
# ---------------------------------------------------------------------------
def _reference(h, w1, b1, w2, b2, *, normalize_hidden_states=True,
               normalization=False, target_mean=0.0, target_std=1.0):
    h = h.astype(jnp.float32)
    if normalize_hidden_states:
        nrm = jnp.sqrt(jnp.sum(h * h, axis=-1, keepdims=True))
        h = h / jnp.maximum(nrm, 1e-12)
    B, L, D = h.shape
    h_i = jnp.broadcast_to(h[:, :, None, :], (B, L, L, D))
    h_j = jnp.broadcast_to(h[:, None, :, :], (B, L, L, D))
    pf = jnp.concatenate([h_i, h_j], axis=-1)               # (B, L, L, 2D)
    hid = jnp.maximum(
        jnp.dot(pf, w1, precision=jax.lax.Precision.HIGHEST) + b1, 0.0)
    pred = jnp.dot(hid, w2, precision=jax.lax.Precision.HIGHEST) + b2
    pred = (pred + jnp.swapaxes(pred, 1, 2)) / 2.0
    if normalization:
        pred = pred * target_std + target_mean
    return pred


if __name__ == "__main__":
    # Trunk hidden D=32 (small stand-in), classifier hidden H=128 (fixed in the
    # module), task_num_labels C in {1, 2}.
    D, H = 32, 128
    key = jax.random.PRNGKey(0)

    def make_head(k, C):
        kw1, kb1, kw2, kb2 = jax.random.split(k, 4)
        w1 = jax.random.normal(kw1, (2 * D, H), dtype=jnp.float32) * 0.05
        b1 = jax.random.normal(kb1, (H,), dtype=jnp.float32) * 0.05
        w2 = jax.random.normal(kw2, (H, C), dtype=jnp.float32) * 0.05
        b2 = jax.random.normal(kb2, (C,), dtype=jnp.float32) * 0.05
        return w1, b1, w2, b2

    cases = [
        # name,        B, L,   C, normalize, norm,  mean, std
        ("tiny",       2, 8,   1, True,      False, 0.0,  1.0),   # fast path, 1 tile
        ("padded",     1, 136, 1, True,      True,  0.25, 2.0),   # fast, pad 136->144
        ("tiled",      1, 300, 1, True,      False, 0.0,  1.0),   # fast, 3x3 tile grid
        ("multilabel", 1, 16,  2, False,     True,  0.1,  0.5),   # general path (C=2)
    ]
    for idx, (name, B, L, C, normalize, norm, mean, std) in enumerate(cases):
        kh, kw = jax.random.split(jax.random.fold_in(key, idx))
        w1, b1, w2, b2 = make_head(kw, C)
        h = jax.random.normal(kh, (B, L, D), dtype=jnp.float32)

        out = contact_prediction_forward(
            h, w1, b1, w2, b2,
            normalize_hidden_states=normalize, normalization=norm,
            target_mean=mean, target_std=std)
        out = jax.block_until_ready(out)
        ref = _reference(h, w1, b1, w2, b2,
                         normalize_hidden_states=normalize, normalization=norm,
                         target_mean=mean, target_std=std)

        assert out.shape == (B, L, L, C), (name, out.shape)
        max_err = float(jnp.max(jnp.abs(out - ref)))
        assert bool(jnp.allclose(out, ref, atol=3e-3, rtol=3e-3)), (name, max_err)

    print("KERNEL_OK")
</pallas_src>

<mosaic_0001>
module attributes {stable_mosaic.version = 11 : i64} {
  func.func @_project_kernel(%arg0: i32, %arg1: i32, %arg2: memref<1x8x32xf32, #tpu.memory_space<vmem>>, %arg3: memref<32x288xf32, #tpu.memory_space<vmem>>, %arg4: memref<1x144xf32, #tpu.memory_space<vmem>>, %arg5: memref<1x8x144xf32, #tpu.memory_space<vmem>>, %arg6: memref<1x144x8xf32, #tpu.memory_space<vmem>>) attributes {dimension_semantics = [#tpu.dimension_semantics<parallel>, #tpu.dimension_semantics<parallel>], iteration_bounds = array<i64: 2, 1>, scalar_prefetch = 0 : i64, scratch_operands = 0 : i64, tpu.core_type = #tpu.core_type<tc>, window_params = [{transform_indices = @transform_0, window_bounds = array<i64: 1, 8, 32>}, {pipeline_mode = #tpu.pipeline_mode<synchronous>, transform_indices = @transform_1, window_bounds = array<i64: 32, 288>}, {pipeline_mode = #tpu.pipeline_mode<synchronous>, transform_indices = @transform_2, window_bounds = array<i64: 1, 144>}, {transform_indices = @transform_3, window_bounds = array<i64: 1, 8, 144>}, {transform_indices = @transform_4, window_bounds = array<i64: 1, 144, 8>}]} {
    %c0 = arith.constant 0 : index
    %c0_0 = arith.constant 0 : index
    %c0_1 = arith.constant 0 : index
    %0 = vector.load %arg2[%c0, %c0_0, %c0_1] : memref<1x8x32xf32, #tpu.memory_space<vmem>>, vector<1x8x32xf32>
    %1 = vector.shape_cast %0 : vector<1x8x32xf32> to vector<8x32xf32>
    %2 = arith.mulf %1, %1 : vector<8x32xf32>
    %cst = arith.constant dense<0.000000e+00> : vector<8xf32>
    %3 = vector.multi_reduction <add>, %2, %cst [1] : vector<8x32xf32> to vector<8xf32>
    %4 = vector.shape_cast %3 : vector<8xf32> to vector<8x1xf32>
    %cst_2 = arith.constant 1.000000e-24 : f32
    %5 = vector.broadcast %cst_2 : f32 to vector<8x1xf32>
    %6 = arith.maximumf %4, %5 : vector<8x1xf32>
    %7 = math.rsqrt %6 : vector<8x1xf32>
    %8 = vector.broadcast %7 : vector<8x1xf32> to vector<8x32xf32>
    %9 = arith.mulf %1, %8 : vector<8x32xf32>
    %c0_3 = arith.constant 0 : index
    %c0_4 = arith.constant 0 : index
    %10 = vector.load %arg3[%c0_3, %c0_4] : memref<32x288xf32, #tpu.memory_space<vmem>>, vector<32x288xf32>
    %cst_5 = arith.constant dense<0.000000e+00> : vector<8x288xf32>
    %11 = tpu.matmul %9, %10, %cst_5 {dimension_numbers = #tpu.dot_dimension_numbers<[1], [0], [0], [1], [0, 0, 1, 1], [], []>} : vector<8x32xf32>, vector<32x288xf32>, vector<8x288xf32> -> vector<8x288xf32>
    %12 = vector.extract_strided_slice %11 {offsets = [0, 0], sizes = [8, 144], strides = [1, 1]} : vector<8x288xf32> to vector<8x144xf32>
    %c0_6 = arith.constant 0 : index
    %c0_7 = arith.constant 0 : index
    %13 = vector.load %arg4[%c0_6, %c0_7] : memref<1x144xf32, #tpu.memory_space<vmem>>, vector<1x144xf32>
    %14 = vector.broadcast %13 : vector<1x144xf32> to vector<8x144xf32>
    %15 = arith.addf %12, %14 : vector<8x144xf32>
    %c0_8 = arith.constant 0 : index
    %c0_9 = arith.constant 0 : index
    %c0_10 = arith.constant 0 : index
    %16 = vector.load %arg5[%c0_8, %c0_9, %c0_10] : memref<1x8x144xf32, #tpu.memory_space<vmem>>, vector<1x8x144xf32>
    %17 = vector.shape_cast %16 : vector<1x8x144xf32> to vector<8x144xf32>
    %18 = vector.shape_cast %15 : vector<8x144xf32> to vector<1x8x144xf32>
    tpu.vector_store %arg5[%c0_8, %c0_9, %c0_10], %18 {strides = array<i32>} : memref<1x8x144xf32, #tpu.memory_space<vmem>>, vector<1x8x144xf32>,
    %19 = vector.extract_strided_slice %11 {offsets = [0, 144], sizes = [8, 144], strides = [1, 1]} : vector<8x288xf32> to vector<8x144xf32>
    %20 = tpu.transpose %19, [1, 0] : vector<8x144xf32> -> vector<144x8xf32>
    %c0_11 = arith.constant 0 : index
    %c0_12 = arith.constant 0 : index
    %c0_13 = arith.constant 0 : index
    %21 = vector.load %arg6[%c0_11, %c0_12, %c0_13] : memref<1x144x8xf32, #tpu.memory_space<vmem>>, vector<1x144x8xf32>
    %22 = vector.shape_cast %21 : vector<1x144x8xf32> to vector<144x8xf32>
    %23 = vector.shape_cast %20 : vector<144x8xf32> to vector<1x144x8xf32>
    tpu.vector_store %arg6[%c0_11, %c0_12, %c0_13], %23 {strides = array<i32>} : memref<1x144x8xf32, #tpu.memory_space<vmem>>, vector<1x144x8xf32>,
    return
  }
  func.func @transform_0(%arg0: i32, %arg1: i32) -> (i32, i32, i32) {
    %c0_i32 = arith.constant 0 : i32
    %c0_i32_0 = arith.constant 0 : i32
    return %arg0, %arg1, %c0_i32 : i32, i32, i32
  }
  func.func @transform_1(%arg0: i32, %arg1: i32) -> (i32, i32) {
    %c0_i32 = arith.constant 0 : i32
    %c0_i32_0 = arith.constant 0 : i32
    %c0_i32_1 = arith.constant 0 : i32
    return %c0_i32, %c0_i32_0 : i32, i32
  }
  func.func @transform_2(%arg0: i32, %arg1: i32) -> (i32, i32) {
    %c0_i32 = arith.constant 0 : i32
    %c0_i32_0 = arith.constant 0 : i32
    %c0_i32_1 = arith.constant 0 : i32
    return %c0_i32, %c0_i32_0 : i32, i32
  }
  func.func @transform_3(%arg0: i32, %arg1: i32) -> (i32, i32, i32) {
    %c0_i32 = arith.constant 0 : i32
    %c0_i32_0 = arith.constant 0 : i32
    return %arg0, %arg1, %c0_i32 : i32, i32, i32
  }
  func.func @transform_4(%arg0: i32, %arg1: i32) -> (i32, i32, i32) {
    %c0_i32 = arith.constant 0 : i32
    %c0_i32_0 = arith.constant 0 : i32
    return %arg0, %c0_i32, %arg1 : i32, i32, i32
  }
}

</mosaic_0001>

<bundles_post_ra>
// kernel: tpu_custom_call.1
= control target key start
LH: loop header
LB: loop body
LE: loop exit
PB: predicated region body
PF: predicated region fallthrough
CT: control target
= control target key end

     0   :  { %10 = vsyncpa [#allocation3], 0  ;;  %s1267_s0 = inlined_call_operand.hbm [shape: f32[2,8,32], index: 0, kind: input, shape index: {}]   ;;  %s1268_s1 = inlined_call_operand.hbm [shape: f32[32,288], index: 1, kind: input, shape index: {}]   ;;  %s1269_s2 = inlined_call_operand.vmem [shape: f32[1,144], index: 2, kind: input, shape index: {}]   ;;  %s1270_s3 = inlined_call_operand.hbm [shape: f32[2,8,144], index: 3, kind: output, shape index: {0}]   ;;  %s1271_s4 = inlined_call_operand.vmem [shape: f32[2,144,8], index: 4, kind: output, shape index: {1}]  }
   0x1   :  { %12 = vsyncpa [#allocation3 + $0x1], 0 }
   0x2   :  { %13 = vsyncpa [#allocation6], 0 }
   0x3   :  { %14 = vsyncpa [#allocation4], 0 }
   0x4   :  { %16 = vsyncpa [#allocation4 + $0x1], 0  ;;  %s1009_s15 = smov 0   ;;  %s1011_s16 = smov 0  }
   0x5   :  { %s1013_s17 = smov 0   ;;  %s1015_s18 = smov 0  }
   0x6   :  { %s1017_s19 = smov 0   ;;  %s1019_s20 = smov 0  }
   0x7 LB: > { %s697_s21 = sadd.s32 4294967295, %s973_s20   ;;  %s698_s22 = sadd.s32 4294967294, %s973_s20   ;;  %s973_s20 = sphi %s1019_s20, %s22_s20   ;;  %s969_s19 = sphi %s1017_s19, %s1295_s19   ;;  %s965_s18 = sphi %s1015_s18, %s1294_s18   ;;  %s961_s17 = sphi %s1013_s17, %s1293_s17   ;;  %s957_s16 = sphi %s1011_s16, %s1292_s16   ;;  %s953_s15 = sphi %s1009_s15, %s1291_s15  }
   0x8   : > { %p56_p0 = scmp.ne.s32.totalorder %s957_s16, %s953_s15  ;;  %p1043_p1 = scmp.eq.s32.totalorder %s697_s21, 0 }
   0x9   : > { %p1047_p2 = scmp.eq.s32.totalorder %s697_s21, 1  ;;  %p130_p3 = scmp.eq.s32.totalorder %s698_s22, 1 }
   0xa   : > { %s1276_s23 = scalar_select %p1043_p1, 1, 0 }
   0xb   : > { %s1277_s24 = scalar_select %p1047_p2, 1, 0 }
   0xc   : > { %p1053_p4 = por %p1043_p1, %p56_p0  ;;  %p699_p5 = scmp.ge.s32.totalorder %s973_s20, 1 }
   0xd   : > { %p1058_p6 = por %p130_p3, %p56_p0  ;;  %p165_p7 = scmp.lt.s32.totalorder %s973_s20, 3 }
   0xe   : > { %s1278_s25 = scalar_select %p1053_p4, 1, 0 }
   0xf   : > { %s1279_s26 = scalar_select %p1058_p6, 1, 0 }
  0x10   : > { %p1063_p8 = pnand %p699_p5, %p165_p7  ;;  %s975_s28 = smov [#allocation5]  }
  0x11   : > { %s177_s29 = sshll.u32 %s975_s28, 4  ;;  %s34_s5 = sadd.s32 1, %s969_s19  ;;  %s178_s29 = int_to_ptr.vmem [resolvable:$true] %s177_s29 }
  0x12   : > { %s1280_s27 = scalar_select %p1063_p8, 1, 0 }
  0x13   : > { %p756_p9 = pneg %p1063_p8  ;;  %s829_s8 = scalar_lea.hbm %s1268_s1, 1536 }
  0x14   : > { %p830_p12 = scmp.ne.s32.totalorder %s1268_s1, %s829_s8  ;;  %p836_p5 = scmp.lt.u32.totalorder %s829_s8, %s1268_s1 }
  0x15   : > { %p1072_p11 = pnand %p756_p9, %p1043_p1 }
  0x17   : > { %p831_p13 = pneg %p1072_p11 }
  0x19   : > { %p832_p0 = pnand %p831_p13, %p830_p12 }
  0x1b   : > { %p833_p3 = pneg %p832_p0 }
  0x1d   : > { %p838_p7 = pnand %p836_p5, %p833_p3 }
  0x1f   : > { %841 = shalt.err (!%p838_p7)
}
  0x20   : > { %s842_s13 = scalar_lea.vmem %s178_s29, 1536  ;;  %p850_p1 = scmp.lt.s32.totalorder %s178_s29, %s178_s29 }
  0x21   : > { %p843_p9 = scmp.ne.s32.totalorder %s178_s29, %s842_s13  ;;  %p851_p4 = scmp.lt.s32.totalorder %s842_s13, %s842_s13 }
  0x23   : > { %p845_p10 = pnand %p843_p9, %p831_p13  ;;  %p852_p8 = por %p851_p4, %p850_p1 }
  0x25   : > { %p846_p6 = pneg %p845_p10 }
  0x27   : > { %p853_p2 = pnand %p852_p8, %p846_p6 }
  0x29   : > { %856 = shalt.err (!%p853_p2)
}
  0x2a   : > { %s976_s14 = smov 384   ;;  %s977_s21 = smov 24  }
  0x2b   : > { %759 = dma.hbm_to_vmem [thread:$0]  (!%p1072_p11), %s1268_s1, 1536, %s178_s29, [#allocation6], %s976_s14, %s976_s14, %s977_s21  }
  0x2c   : > { %p36_p1 = scmp.ge.s32.totalorder %s34_s5, 2  ;;  %s43_s6 = sadd.s32 1, %s961_s17 }
  0x2d   : > { %p50_p2 = scmp.ne.s32.totalorder %s961_s17, %s957_s16  ;;  %p51_p4 = scmp.eq.s32.totalorder %s973_s20, 0 }
  0x2e   : > { %s1297_s5 = smov (%p36_p1, %s34_s5), 0  ;;  %p1283_p8 = scmp.ne.s32.totalorder %s1277_s24, 0 }
  0x2f   : > { %p1099_p6 = por %p51_p4, %p50_p2  ;;  %s38_s30 = ssub.s32 %s969_s19, %s1297_s5 }
  0x30   : > { %p1105_p10 = por %p1283_p8, %p50_p2  ;;  %p769_p12 = scmp.lt.s32.totalorder %s973_s20, 2 }
  0x31   : > { %p41_p11 = scmp.eq.s32.totalorder %s38_s30, 0  ;;  %s194_s29 = sand.u32 1, %s961_s17  }
  0x32   : > { %s702_s9 = sshll.u32 %s194_s29, 3  ;;  %s703_s11 = sshll.u32 %s969_s19, 7 }
  0x33   : > { %s1114_s10 = scalar_select %p41_p11, %s961_s17, %s43_s6  }
  0x34   : > { %s1120_s14 = scalar_lea.hbm %s1267_s0, %s703_s11  ;;  %s198_s24 = scalar_lea.vmem [#allocation2], %s702_s9 }
  0x35   : > { %s206_s21 = sshll.u32 %s198_s24, 4  ;;  %p1126_p13 = pnand %p769_p12, %p1099_p6  ;;  %s1122_s21 = int_to_ptr.vmem [resolvable:$true] %s206_s21 }
  0x36   : > { %s195_s28 = scalar_lea.sflag [#allocation3], %s194_s29  ;;  %s857_s6 = scalar_lea.hbm %s1120_s14, 128 }
  0x37   : > { %p858_p0 = scmp.ne.s32.totalorder %s1120_s14, %s857_s6  ;;  %p859_p3 = pneg %p1126_p13 }
  0x38   : > { %s862_s11 = scalar_lea.hbm %s1267_s0, 256  ;;  %p863_p9 = scmp.lt.u32.totalorder %s1120_s14, %s1267_s0 }
  0x39   : > { %p860_p5 = pnand %p859_p3, %p858_p0  ;;  %p864_p1 = scmp.lt.u32.totalorder %s862_s11, %s857_s6 }
  0x3a   : > { %p866_p4 = scmp.lt.u32.totalorder %s857_s6, %s1120_s14 }
  0x3b   : > { %p861_p7 = pneg %p860_p5  ;;  %p865_p2 = por %p864_p1, %p863_p9 }
  0x3d   : > { %p867_p6 = por %p866_p4, %p865_p2 }
  0x3f   : > { %p868_p8 = pnand %p867_p6, %p861_p7 }
  0x41   : > { %871 = shalt.err (!%p868_p8)
}
  0x42   : > { %s872_s29 = scalar_lea.vmem %s1122_s21, 128  ;;  %s978_s13 = smov [#allocation2]  }
  0x43   : > { %p873_p12 = scmp.ne.s32.totalorder %s1122_s21, %s872_s29  ;;  %s877_s24 = sshll.u32 %s978_s13, 4  ;;  %s878_s24 = int_to_ptr.vmem [resolvable:$false] %s877_s24 }
  0x44   : > { %s879_s30 = scalar_lea.vmem %s878_s24, 256  ;;  %p880_p5 = scmp.lt.s32.totalorder %s1122_s21, %s878_s24 }
  0x45   : > { %p875_p11 = pnand %p873_p12, %p859_p3  ;;  %p881_p9 = scmp.lt.s32.totalorder %s879_s30, %s872_s29 }
  0x47   : > { %p876_p0 = pneg %p875_p11  ;;  %p882_p1 = por %p881_p9, %p880_p5 }
  0x49   : > { %p883_p2 = pnand %p882_p1, %p876_p0 }
  0x4b   : > { %886 = shalt.err (!%p883_p2)
}
  0x4c   : > { %763 = dma.hbm_to_vmem [thread:$0]  (!%p1126_p13), %s1120_s14, 128, %s1122_s21, %s195_s28  }
  0x4d   : > { %p1286_p7 = scmp.ne.s32.totalorder %s1280_s27, 0 }
  0x4e   : > { %s1158_s6 = sand.u32 (!%p1286_p7), 1, %s957_s16   ;;  %p1287_p3 = scmp.ne.s32.totalorder (!%p1286_p7), %s1278_s25, 0 }
  0x4f   : > { %215 = sbr.rel (%p1286_p7) target bundleno = 770 (0x302), region = 32  ;;  %s705_s9 = sshll.u32 (!%p1286_p7), %s1158_s6, 3 }
  0x50   : > { %s218_s11 = scalar_lea.sflag (!%p1286_p7), [#allocation3], %s1158_s6  ;;  %s221_s7 = scalar_lea.vmem (!%p1286_p7), [#allocation2], %s705_s9 }
  0x56   : > { %940 = dma.done.wait (%p1287_p3), %s218_s11, 128  }
  0x57   : > { %942 = vsyncadd (%p1287_p3), %s218_s11, 4294967168  ;;  %p1288_p4 = scmp.ne.s32.totalorder %s1276_s23, 0 }
  0x59   : > { %944 = dma.done.wait (%p1288_p4), [#allocation6], 1536  }
  0x5a   : > { %946 = vsyncadd (%p1288_p4), [#allocation6], 4294965760  ;;  %v266_v0 = vld [vmem:[%s221_s7] sm:$0xff]  ;;  %vm268_vm0 = vcmask 261120   ;;  %v276_v3 = vld [vmem:[#allocation5 + $0x8] sm:$0xff]  ;;  %v979_v7 = vmov 0.0|0.0   ;;  %v433_v27 = vlaneseq }
  0x5b   : > { %v267_v1 = vmul.f32 %v266_v0, %v266_v0  ;;  %v279_v4 = vld [vmem:[#allocation5 + $0x20] sm:$0xff]  ;;  %741 = vmatprep.subr.bf16.mxu1 %v979_v7  ;;  %v278_v8 = vld [vmem:[#allocation5 + $0x18] sm:$0xff]  ;;  %v277_v9 = vld [vmem:[#allocation5 + $0x10] sm:$0xff]  ;;  %v980_v11 = vmov 0.0   ;;  %vm981_vm1 = vmmov 0   ;;  %s707_s27 = sshll.u32 %s1158_s6, 4 }
  0x5c   : > { %v275_v5 = vld [vmem:[#allocation5] sm:$0xff]  ;;  %v733_v6 = vpack.c.bf16 %v279_v4, %v276_v3  ;;  %v280_v10 = vld [vmem:[#allocation5 + $0x28] sm:$0xff]  ;;  %354 = vmatprep.mubr.f32.mxu0 %v980_v11  ;;  %v282_v14 = vld [vmem:[#allocation5 + $0x38] sm:$0xff]  ;;  %730 = vmatprep.mubr.msk.f32.mxu1 %vm981_vm1, %v980_v11  ;;  %v434_v28 = vshrl.u32 %v433_v27, 7  ;;  %s982_s14 = smov 112   ;;  %vm446_vm2 = vcmask 130048  }
  0x5d   : > { %v269_v2 = vsel %vm268_vm0, %v267_v1, 0.0  ;;  %v735_v12 = vpack.c.bf16 %v278_v8, %v275_v5  ;;  %v742_v13 = vpack.c.bf16 %v280_v10, %v277_v9  ;;  %v285_v15 = vld [vmem:[#allocation5 + $0x50] sm:$0xff]  ;;  %v284_v18 = vld [vmem:[#allocation5 + $0x48] sm:$0xff]  ;;  %v283_v19 = vld [vmem:[#allocation5 + $0x40] sm:$0xff]  ;;  %s247_s21 = scalar_lea.vmem [#allocation7], %s707_s27  ;;  %vm454_vm3 = vcmask 916480  }
  0x5e   : > { %270 = vadd.xlane.f32.xlu0 %v269_v2  ;;  %v281_v16 = vld [vmem:[#allocation5 + $0x30] sm:$0xff]  ;;  %734 = vmatprep.subr.bf16.mxu0 %v733_v6  ;;  %v737_v17 = vpack.c.bf16 %v285_v15, %v282_v14  ;;  %v286_v20 = vld [vmem:[#allocation5 + $0x58] sm:$0xff]  ;;  %v435_v29 = vsub.s32 0, %v434_v28  ;;  %v439_v31 = vsub.s32 1, %v434_v28  ;;  %s716_s22 = sshll.u32 %s965_s18, 8  ;;  %s566_s28 = sshll.u32 %s247_s21, 4  ;;  %s567_s28 = int_to_ptr.vmem [resolvable:$true] %s566_s28 }
  0x5f   : > { %736 = vmatpush1.bf16.msra.mxu0 %v735_v12  ;;  %743 = vmatpush3.bf16.msra.mxu1 %v742_v13  ;;  %v739_v21 = vpack.c.bf16 %v284_v18, %v281_v16  ;;  %v745_v22 = vpack.c.bf16 %v286_v20, %v283_v19  ;;  %v431_v30 = vld [vmem:[%s1269_s2] sm:$0x3]  ;;  %s1181_s13 = scalar_lea.hbm %s1270_s3, %s716_s22  ;;  %s542_s24 = scalar_lea.sflag [#allocation4], %s1158_s6 }
  0x60   : > { %738 = vmatprep.subr.bf16.mxu0 %v737_v17  ;;  %744 = vmatprep.subr.bf16.mxu1 %v979_v7  ;;  %v436_v32 = vrot.slane %v431_v30, %v435_v29  ;;  %v440_v33 = vrot.slane %v431_v30, %v439_v31  ;;  %s887_s30 = scalar_lea.vmem %s567_s28, 256  ;;  %s983_s9 = smov [#allocation7]  }
  0x61   : > { %p888_p13 = scmp.ne.s32.totalorder %s567_s28, %s887_s30  ;;  %s891_s11 = sshll.u32 %s983_s9, 4  ;;  %s892_s11 = int_to_ptr.vmem [resolvable:$false] %s891_s11 }
  0x62   : > { %s893_s7 = scalar_lea.vmem %s892_s11, 512  ;;  %p894_p12 = scmp.lt.s32.totalorder %s567_s28, %s892_s11 }
  0x63   : > { %740 = vmatpush1.bf16.msra.mxu0 %v739_v21  ;;  %746 = vmatpush3.bf16.msra.mxu1 %v745_v22  ;;  %p889_p6 = pnand %p888_p13, %p1105_p10  ;;  %p895_p11 = scmp.lt.s32.totalorder %s893_s7, %s887_s30 }
  0x65   : > { %p890_p8 = pneg %p889_p6  ;;  %p896_p0 = por %p895_p11, %p894_p12 }
  0x67   : > { %p897_p5 = pnand %p896_p0, %p890_p8 }
  0xeb   : > { %v271_v23 = vpop.xlane.xlu0 %270 }
  0xec   : > { %v272_v24 = vmax.f32 %v271_v23, 1e-24 }
  0xee   : > { %827 = vrsqrt.f32 %v272_v24 }
  0xf8   : > { %v828_v25 = vpop.eup %827 }
  0xf9   : > { %v274_v26 = vmul.f32 %v828_v25, %v266_v0 }
  0xfb   : > { %709 = vmatmul.mubr.msk.f32.vlgmr.msra.gmra.mrb[0].mxu0 %vm268_vm0, %v274_v26  ;;  %731 = vmatmul.mubr.msk.f32.vlgmr.msra.gmra.mrb[0].mxu1 %vm268_vm0, %v274_v26 }
 0x1ce   : > { %v356_v34 = vpop.f32.mrb[0].mxu0  ;;  %v427_v35 = vpop.f32.mrb[0].mxu1 }
 0x1cf   : > { %v443_v36 = vadd.f32 %v436_v32, %v356_v34  ;;  %452 = vrot.lane.b32.xlu1 %v427_v35, %s982_s14  ;;  %v358_v37 = vpop.f32.mrb[1].mxu0  ;;  %v732_v38 = vpop.f32.mrb[1].mxu1 }
 0x1d0   : > { %v444_v39 = vadd.f32 %v440_v33, %v358_v37  ;;  %450 = vrot.lane.b32.xlu0 %v358_v37, %s982_s14 }
 0x1d1   : > { %445 = vst [vmem:[%s247_s21] sm:$0xff] %v443_v36 }
 0x1d2   : > { %447 = vst.msk [vmem:[%s247_s21 + $0x8] sm:$0xff] %vm446_vm2, %v444_v39 }
 0x241   : > { %v453_v40 = vpop.permute.xlu1 %452 }
 0x242   : > { %490 = vxpose.xlu0.b32.start.end [1/1] (short) (narrow) %v453_v40, 16  ;;  %v451_v41 = vpop.permute.xlu0 %450 }
 0x243   : > { %v455_v42 = vsel %vm454_vm3, %v451_v41, %v453_v40 }
 0x244   : > { %458 = vxpose.xlu1.b32.start.end [1/1] (short) %v455_v42, 128 }
 0x245   : > { %900 = shalt.err (!%p897_p5)
}
 0x246   : > { %s901_s6 = scalar_lea.hbm %s1181_s13, 256  ;;  %s905_s27 = scalar_lea.hbm %s1270_s3, 512 }
 0x247   : > { %p902_p9 = scmp.ne.s32.totalorder %s1181_s13, %s901_s6  ;;  %p906_p7 = scmp.lt.u32.totalorder %s1181_s13, %s1270_s3 }
 0x248   : > { %p907_p3 = scmp.lt.u32.totalorder %s905_s27, %s901_s6  ;;  %p909_p13 = scmp.lt.u32.totalorder %s901_s6, %s1181_s13 }
 0x249   : > { %p903_p1 = pnand %p902_p9, %p1105_p10 }
 0x24a   : > { %p908_p4 = por %p907_p3, %p906_p7 }
 0x24b   : > { %p904_p2 = pneg %p903_p1 }
 0x24c   : > { %p910_p6 = por %p909_p13, %p908_p4 }
 0x24e   : > { %p911_p8 = pnand %p910_p6, %p904_p2 }
 0x250   : > { %914 = shalt.err (!%p911_p8)
}
 0x251   : > { %754 = dma.vmem_to_hbm [thread:$0]  (%p1105_p10), %s567_s28, 256, %s1181_s13, %s542_s24   ;;  %vm522_vm4 = vcmask 64512  }
 0x252   : > { %p258_p12 = scmp.lt.s32.totalorder %s965_s18, 1 }
 0x254   : > { %s1299_s18 = smov (!%p258_p12, %s965_s18), 1 }
 0x255   : > { %s747_s22 = smul.u32 144, %s1299_s18 }
 0x257   : > { %s1206_s30 = scalar_lea.vmem %s1271_s4, %s747_s22 }
 0x2c2   : > { %v506_v43 = vpop.trf.xlu0 }
 0x2c3   : > { %539 = vst.msk [vmem:[%s1206_s30 + $0x80] sm:$0xff] %vm522_vm4, %v506_v43 }
 0x2c4   : > { %v474_v44 = vpop.trf.xlu1 }
 0x2c5   : > { %523 = vst.msk [vmem:[%s1206_s30] sm:$0xff] %vm522_vm4, %v474_v44 }
 0x2c6   : > { %v507_v45 = vpop.trf.xlu0 }
 0x2c7   : > { %540 = vst.msk [vmem:[%s1206_s30 + $0x88] sm:$0xff] %vm522_vm4, %v507_v45 }
 0x2c8   : > { %v475_v46 = vpop.trf.xlu1 }
 0x2c9   : > { %524 = vst.msk [vmem:[%s1206_s30 + $0x8] sm:$0xff] %vm522_vm4, %v475_v46 }
 0x2cc   : > { %v476_v47 = vpop.trf.xlu1 }
 0x2cd   : > { %525 = vst.msk [vmem:[%s1206_s30 + $0x10] sm:$0xff] %vm522_vm4, %v476_v47 }
 0x2d0   : > { %v477_v48 = vpop.trf.xlu1 }
 0x2d1   : > { %526 = vst.msk [vmem:[%s1206_s30 + $0x18] sm:$0xff] %vm522_vm4, %v477_v48 }
 0x2d4   : > { %v478_v49 = vpop.trf.xlu1 }
 0x2d5   : > { %527 = vst.msk [vmem:[%s1206_s30 + $0x20] sm:$0xff] %vm522_vm4, %v478_v49 }
 0x2d8   : > { %v479_v50 = vpop.trf.xlu1 }
 0x2d9   : > { %528 = vst.msk [vmem:[%s1206_s30 + $0x28] sm:$0xff] %vm522_vm4, %v479_v50 }
 0x2dc   : > { %v480_v51 = vpop.trf.xlu1 }
 0x2dd   : > { %529 = vst.msk [vmem:[%s1206_s30 + $0x30] sm:$0xff] %vm522_vm4, %v480_v51 }
 0x2e0   : > { %v481_v52 = vpop.trf.xlu1 }
 0x2e1   : > { %530 = vst.msk [vmem:[%s1206_s30 + $0x38] sm:$0xff] %vm522_vm4, %v481_v52 }
 0x2e4   : > { %v482_v53 = vpop.trf.xlu1 }
 0x2e5   : > { %531 = vst.msk [vmem:[%s1206_s30 + $0x40] sm:$0xff] %vm522_vm4, %v482_v53 }
 0x2e8   : > { %v483_v54 = vpop.trf.xlu1 }
 0x2e9   : > { %532 = vst.msk [vmem:[%s1206_s30 + $0x48] sm:$0xff] %vm522_vm4, %v483_v54 }
 0x2ec   : > { %v484_v55 = vpop.trf.xlu1 }
 0x2ed   : > { %533 = vst.msk [vmem:[%s1206_s30 + $0x50] sm:$0xff] %vm522_vm4, %v484_v55 }
 0x2f0   : > { %v485_v56 = vpop.trf.xlu1 }
 0x2f1   : > { %534 = vst.msk [vmem:[%s1206_s30 + $0x58] sm:$0xff] %vm522_vm4, %v485_v56 }
 0x2f4   : > { %v486_v57 = vpop.trf.xlu1 }
 0x2f5   : > { %535 = vst.msk [vmem:[%s1206_s30 + $0x60] sm:$0xff] %vm522_vm4, %v486_v57 }
 0x2f8   : > { %v487_v58 = vpop.trf.xlu1 }
 0x2f9   : > { %536 = vst.msk [vmem:[%s1206_s30 + $0x68] sm:$0xff] %vm522_vm4, %v487_v58 }
 0x2fc   : > { %v488_v59 = vpop.trf.xlu1 }
 0x2fd   : > { %537 = vst.msk [vmem:[%s1206_s30 + $0x70] sm:$0xff] %vm522_vm4, %v488_v59 }
 0x300   : > { %v489_v60 = vpop.trf.xlu1 }
 0x301   : > { %538 = vst.msk [vmem:[%s1206_s30 + $0x78] sm:$0xff] %vm522_vm4, %v489_v60 }
 0x302 PF: > { %s581_s18 = sand.u32 1, %s953_s15   ;;  %p1289_p10 = scmp.ne.s32.totalorder %s1279_s26, 0 }
 0x303   : > { %p1290_p11 = scmp.ge.s32.totalorder %s973_s20, 2  ;;  %s582_s8 = scalar_lea.sflag [#allocation4], %s581_s18 }
 0x305   : > { %p765_p0 = pnand %p1290_p11, %p1289_p10 }
 0x307   : > { %948 = dma.done.wait (!%p765_p0), %s582_s8, 256  }
 0x308   : > { %950 = vsyncadd (!%p765_p0), %s582_s8, 4294967040  ;;  %s22_s20 = sadd.s32 1, %s973_s20   ;;  %s1291_s15 = smov %s957_s16 }
 0x309   : > { %p19_p5 = scmp.ge.s32.totalorder %s22_s20, 4   ;;  %s1292_s16 = smov %s961_s17 }
 0x30a   : > { %s1293_s17 = smov %s1114_s10  ;;  %s1294_s18 = smov %s969_s19 }
 0x30b   : > { %s1295_s19 = smov %s1297_s5  ;;  %21 = sbr.rel (!%p19_p5) target bundleno = 7 (0x7), region = 93 }
 0x312   :  { %598 = vsyncpa [#allocation3], 1 }
 0x313   :  { %600 = vsyncpa [#allocation3 + $0x1], 1 }
 0x314   :  { %601 = vsyncpa [#allocation6], 1 }
 0x315   :  { %602 = vsyncpa [#allocation4], 1 }
 0x316   :  { %604 = vsyncpa [#allocation4 + $0x1], 1 }

</bundles_post_ra>
